<compile_context>
chip_gen: v7x
topology: tpu7x:2x2x1
jax: 0.10.0
libtpu: 0.0.40
codegen_flags: <defaults>
</compile_context>

<pallas_src>
import jax
import jax.numpy as jnp
from jax import lax
from jax.experimental import pallas as pl
from jax.experimental.pallas import tpu as pltpu

VOCAB = 50
VOCAB_PAD = 64                   # tok_emb rows padded (ids < 50 never hit pad rows)
SEG_PAD = 8                      # seg_emb rows padded
SEQ = 8                          # must be a power of two (position = flat_row & (SEQ-1))
HIDDEN = 32
FFN = 4 * HIDDEN                 # 128
NUM_CLASSES = 7
LANES = 128                      # lane-dense slab width / padded classifier width
E_ROWS = VOCAB_PAD + SEG_PAD + SEQ   # 80 rows in the embedding slab

# ---- packed bf16 weight-slab row offsets (slab is 128 lanes wide) ----
WR_QKVO = 0                      # rows [0:32]   lanes [Wq | Wk | Wv | Wo] (32 lanes each)
WR_1 = WR_QKVO + HIDDEN          # rows [32:64]  W1  (H, FFN)
WR_2T = WR_1 + HIDDEN            # rows [64:96]  W2^T (H, FFN)  (W2 stored transposed)
WR_C = WR_2T + HIDDEN            # rows [96:128] Wc padded to 128 classes (cols >= 7 zero)
WR_P = WR_C + HIDDEN             # rows [128:160] lanes[0:32] = Wp
W_ROWS = WR_P + HIDDEN           # 160

# ---- packed f32 bias/LN-slab row indices ----
(BR_Q, BR_K, BR_V, BR_O, BR_LN1G, BR_LN1B, BR_1, BR_2,
 BR_LN2G, BR_LN2B, BR_P, BR_C) = range(12)
B_ROWS = 16                      # padded to a multiple of 8 sublanes


def _layer_norm(x, gamma, beta, eps=1e-12):
    mean = jnp.mean(x, axis=-1, keepdims=True)
    var = jnp.mean(jnp.square(x - mean), axis=-1, keepdims=True)
    return (x - mean) * lax.rsqrt(var + eps) * gamma + beta


def bert_classifier_kernel(tok_ref, seg_ref, vlen_ref, emb_ref, w_ref, b_ref, out_ref):
    f32, bf16 = jnp.float32, jnp.bfloat16
    H = HIDDEN
    BS = tok_ref.shape[0]                     # B * SEQ (flat token rows)
    BP = out_ref.shape[0]                     # padded batch rows (multiple of 8)
    B = BS // SEQ                             # real batch

    # ---- fused token/segment/position embedding gather: ONE one-hot MXU matmul ----
    col = lax.broadcasted_iota(jnp.int32, (BS, E_ROWS), 1)
    rows = lax.broadcasted_iota(jnp.int32, (BS, 1), 0)
    posn = jnp.bitwise_and(rows, SEQ - 1)                      # flat_row % SEQ (SEQ pow2)
    tid = tok_ref[...]                                         # (BS, 1) int32
    sid = seg_ref[...]                                         # (BS, 1) int32
    hot = ((col == tid)
           | (col == sid + VOCAB_PAD)
           | (col == posn + VOCAB_PAD + SEG_PAD))
    onehot = hot.astype(f32).astype(bf16)                      # (BS, E_ROWS)
    x = jnp.dot(onehot, emb_ref[...], preferred_element_type=f32)   # (BS, H) f32
    x_bf = x.astype(bf16)

    # ---- static slices of the packed parameter slabs ----
    wq = w_ref[WR_QKVO:WR_QKVO + H, 0 * H:1 * H]
    wk = w_ref[WR_QKVO:WR_QKVO + H, 1 * H:2 * H]
    wv = w_ref[WR_QKVO:WR_QKVO + H, 2 * H:3 * H]
    wo = w_ref[WR_QKVO:WR_QKVO + H, 3 * H:4 * H]
    w1 = w_ref[WR_1:WR_1 + H, :]                               # (H, FFN)
    w2t = w_ref[WR_2T:WR_2T + H, :]                            # (H, FFN) = W2^T
    wc = w_ref[WR_C:WR_C + H, :]                               # (H, 128), cols >= 7 zero
    wp = w_ref[WR_P:WR_P + H, 0:H]

    bq = b_ref[BR_Q:BR_Q + 1, 0:H]
    bk = b_ref[BR_K:BR_K + 1, 0:H]
    bv = b_ref[BR_V:BR_V + 1, 0:H]
    bo = b_ref[BR_O:BR_O + 1, 0:H]
    ln1g = b_ref[BR_LN1G:BR_LN1G + 1, 0:H]
    ln1b = b_ref[BR_LN1B:BR_LN1B + 1, 0:H]
    b1 = b_ref[BR_1:BR_1 + 1, 0:FFN]
    b2 = b_ref[BR_2:BR_2 + 1, 0:H]
    ln2g = b_ref[BR_LN2G:BR_LN2G + 1, 0:H]
    ln2b = b_ref[BR_LN2B:BR_LN2B + 1, 0:H]
    bp = b_ref[BR_P:BR_P + 1, 0:H]
    bc = b_ref[BR_C:BR_C + 1, :]                               # (1, 128), zero past 7

    # ---- K/V projections over the full flat sequence (two plain H x H matmuls) ----
    k_flat = jnp.dot(x_bf, wk, preferred_element_type=f32) + bk      # (BS, H)
    v_flat = jnp.dot(x_bf, wv, preferred_element_type=f32) + bv      # (BS, H)

    # ---- CLS rows via one-hot selection matmul (also pads batch to BP rows) ----
    rb = lax.broadcasted_iota(jnp.int32, (BP, BS), 0)
    cb = lax.broadcasted_iota(jnp.int32, (BP, BS), 1)
    sel = ((cb == rb * SEQ) & (rb < B)).astype(f32).astype(bf16)     # (BP, BS)
    x_cls = jnp.dot(sel, x_bf, preferred_element_type=f32)           # (BP, H)

    q0 = jnp.dot(x_cls.astype(bf16), wq, preferred_element_type=f32) + bq   # (BP, H)

    # ---- attention scores on the MXU: (BP,H) x (BS,H)^T, block-diag + length mask ----
    scores = lax.dot_general(q0, k_flat, (((1,), (1,)), ((), ())),
                             preferred_element_type=f32) * (H ** -0.5)      # (BP, BS)
    # gen_attention_mask: key j (flat) is valid for row b iff  b*SEQ <= j < b*SEQ + valid_len[b]
    lower = rb * SEQ
    vlen = vlen_ref[...]                                                     # (BP, 1) int32
    key_valid = (cb >= lower) & (cb < lower + vlen)
    scores = jnp.where(key_valid, scores, f32(-1e9))

    # ---- softmax over keys (EUP reciprocal keeps the VALU free) ----
    m = jnp.max(scores, axis=-1, keepdims=True)
    e = jnp.exp(scores - m)
    p = e * pl.reciprocal(jnp.sum(e, axis=-1, keepdims=True), approx=True)

    # ---- context + attention output for the CLS rows only ----
    ctx = jnp.dot(p, v_flat, preferred_element_type=f32)                     # (BP, H)
    attn0 = jnp.dot(ctx.astype(bf16), wo, preferred_element_type=f32) + bo

    h0 = _layer_norm(x_cls + attn0, ln1g, ln1b)                              # (BP, H)

    # ---- feed-forward (CLS rows only) ----
    # TODO(synk): HF BERT uses exact erf GELU; tanh approximation kept here (stub encoder).
    ff = jnp.dot(h0.astype(bf16), w1, preferred_element_type=f32) + b1       # (BP, FFN)
    ff = jax.nn.gelu(ff, approximate=True)
    ff = lax.dot_general(ff.astype(bf16), w2t, (((1,), (1,)), ((), ())),
                         preferred_element_type=f32) + b2                    # (BP, H)

    h2 = _layer_norm(h0 + ff, ln2g, ln2b)                                    # (BP, H)

    # ---- BERT pooler: tanh(Linear(h[:, 0])) ----
    pooled = jnp.tanh(jnp.dot(h2.astype(bf16), wp, preferred_element_type=f32) + bp)

    # TODO(synk): dropout path (dr_rate) omitted — dr_rate=None default; would use
    # pltpu.prng_seed + pltpu.stateful_bernoulli for training-mode dropout.

    # ---- classifier Linear(hidden -> num_classes), lane-dense padded to 128 ----
    logits = jnp.dot(pooled.astype(bf16), wc, preferred_element_type=f32) + bc   # (BP, 128)
    out_ref[...] = logits.astype(out_ref.dtype)                 # full unmasked (8,128) store


def init_params(key, hidden=HIDDEN, num_classes=NUM_CLASSES,
                vocab=VOCAB, seq=SEQ, ffn=FFN):
    keys = jax.random.split(key, 12)
    s = 0.02
    return {
        'tok_emb': jax.random.normal(keys[0], (vocab, hidden), jnp.float32) * s,
        'seg_emb': jax.random.normal(keys[1], (2, hidden), jnp.float32) * s,
        'pos_emb': jax.random.normal(keys[2], (seq, hidden), jnp.float32) * s,
        'wq': jax.random.normal(keys[3], (hidden, hidden), jnp.float32) * s,
        'wk': jax.random.normal(keys[4], (hidden, hidden), jnp.float32) * s,
        'wv': jax.random.normal(keys[5], (hidden, hidden), jnp.float32) * s,
        'wo': jax.random.normal(keys[6], (hidden, hidden), jnp.float32) * s,
        'w1': jax.random.normal(keys[7], (hidden, ffn), jnp.float32) * s,
        'w2': jax.random.normal(keys[8], (ffn, hidden), jnp.float32) * s,
        'wp': jax.random.normal(keys[9], (hidden, hidden), jnp.float32) * s,
        'wc': jax.random.normal(keys[10], (hidden, num_classes), jnp.float32) * s,
        'bq': jnp.zeros((1, hidden), jnp.float32),
        'bk': jnp.zeros((1, hidden), jnp.float32),
        'bv': jnp.zeros((1, hidden), jnp.float32),
        'bo': jnp.zeros((1, hidden), jnp.float32),
        'b1': jnp.zeros((1, ffn), jnp.float32),
        'b2': jnp.zeros((1, hidden), jnp.float32),
        'ln1g': jnp.ones((1, hidden), jnp.float32),
        'ln1b': jnp.zeros((1, hidden), jnp.float32),
        'ln2g': jnp.ones((1, hidden), jnp.float32),
        'ln2b': jnp.zeros((1, hidden), jnp.float32),
        'bp': jnp.zeros((1, hidden), jnp.float32),
        'bc': jnp.zeros((1, num_classes), jnp.float32),
    }


def _pad_lanes(a, width=LANES):
    return jnp.pad(a, ((0, 0), (0, width - a.shape[1])))


def pack_params(p):
    """Pack all params into: bf16 embedding slab, bf16 weight slab, f32 bias/LN slab."""
    # weight slab (160, 128) bf16: lane-co-packed Wq|Wk|Wv|Wo, W1, W2^T, Wc(padded), Wp
    qkvo = jnp.concatenate([p['wq'], p['wk'], p['wv'], p['wo']], axis=1)   # (32, 128)
    w_slab = jnp.concatenate([
        qkvo,                       # rows WR_QKVO
        p['w1'],                    # rows WR_1
        p['w2'].T,                  # rows WR_2T (stored transposed -> 128-lane dense)
        _pad_lanes(p['wc']),        # rows WR_C  (cols >= NUM_CLASSES are zero)
        _pad_lanes(p['wp']),        # rows WR_P  (lanes 32..127 zero)
    ], axis=0).astype(jnp.bfloat16)
    assert w_slab.shape == (W_ROWS, LANES)

    # embedding slab (80, 32) bf16: tok (padded to 64 rows) | seg (padded to 8) | pos (8)
    emb_slab = jnp.concatenate([
        jnp.pad(p['tok_emb'], ((0, VOCAB_PAD - VOCAB), (0, 0))),
        jnp.pad(p['seg_emb'], ((0, SEG_PAD - 2), (0, 0))),
        p['pos_emb'],
    ], axis=0).astype(jnp.bfloat16)
    assert emb_slab.shape == (E_ROWS, HIDDEN)

    # bias / LayerNorm slab (16, 128) f32
    b_rows = [p['bq'], p['bk'], p['bv'], p['bo'], p['ln1g'], p['ln1b'],
              p['b1'], p['b2'], p['ln2g'], p['ln2b'], p['bp'], p['bc']]
    b_slab = jnp.concatenate([_pad_lanes(r) for r in b_rows], axis=0)
    b_slab = jnp.pad(b_slab, ((0, B_ROWS - b_slab.shape[0]), (0, 0)))
    assert b_slab.shape == (B_ROWS, LANES)

    return {'emb_slab': emb_slab, 'w_slab': w_slab, 'b_slab': b_slab}


@jax.jit
def bert_classifier_forward(token_ids, valid_length, segment_ids, packed):
    B, S = token_ids.shape
    assert S == SEQ and (SEQ & (SEQ - 1)) == 0
    BP = max(8, ((B + 7) // 8) * 8)                    # pad batch rows -> full-tile store

    # wrapper-side layout plumbing only (no compute): flatten ids, pad valid_length rows
    tok_flat = token_ids.astype(jnp.int32).reshape(B * S, 1)
    seg_flat = segment_ids.astype(jnp.int32).reshape(B * S, 1)
    vlen = jnp.pad(valid_length.astype(jnp.int32).reshape(B, 1), ((0, BP - B), (0, 0)))

    logits_padded = pl.pallas_call(
        bert_classifier_kernel,
        out_shape=jax.ShapeDtypeStruct((BP, LANES), jnp.float32),
        in_specs=[
            pl.BlockSpec(memory_space=pltpu.MemorySpace.VMEM),   # token ids   (B*S, 1) i32
            pl.BlockSpec(memory_space=pltpu.MemorySpace.VMEM),   # segment ids (B*S, 1) i32
            pl.BlockSpec(memory_space=pltpu.MemorySpace.VMEM),   # valid_length (BP, 1) i32
            pl.BlockSpec(memory_space=pltpu.MemorySpace.VMEM),   # emb slab (80, 32) bf16
            pl.BlockSpec(memory_space=pltpu.MemorySpace.VMEM),   # weight slab (160, 128) bf16
            pl.BlockSpec(memory_space=pltpu.MemorySpace.VMEM),   # bias/LN slab (16, 128) f32
        ],
        out_specs=pl.BlockSpec(memory_space=pltpu.MemorySpace.VMEM),
        cost_estimate=pl.CostEstimate(flops=420_000, transcendentals=1_500,
                                      bytes_accessed=60_000),
    )(tok_flat, seg_flat, vlen, packed['emb_slab'], packed['w_slab'], packed['b_slab'])
    return logits_padded[:B, :NUM_CLASSES]


if __name__ == "__main__":
    key = jax.random.PRNGKey(0)
    pkey, tkey, skey = jax.random.split(key, 3)

    B, S = 2, SEQ
    params = init_params(pkey)
    packed = pack_params(params)

    token_ids = jax.random.randint(tkey, (B, S), 0, VOCAB, dtype=jnp.int32)
    segment_ids = jax.random.randint(skey, (B, S), 0, 2, dtype=jnp.int32)
    valid_length = jnp.array([5, 8], dtype=jnp.int32)

    logits = bert_classifier_forward(token_ids, valid_length, segment_ids, packed)
    jax.block_until_ready(logits)
    assert logits.shape == (B, NUM_CLASSES) and logits.dtype == jnp.float32
    print("KERNEL_OK")
</pallas_src>

<mosaic_0001>
module attributes {stable_mosaic.version = 11 : i64} {
  func.func @bert_classifier_kernel(%arg0: memref<16x1xi32, #tpu.memory_space<vmem>>, %arg1: memref<16x1xi32, #tpu.memory_space<vmem>>, %arg2: memref<8x1xi32, #tpu.memory_space<vmem>>, %arg3: memref<80x32xbf16, #tpu.memory_space<vmem>>, %arg4: memref<160x128xbf16, #tpu.memory_space<vmem>>, %arg5: memref<16x128xf32, #tpu.memory_space<vmem>>, %arg6: memref<8x128xf32, #tpu.memory_space<vmem>>) attributes {dimension_semantics = [], scalar_prefetch = 0 : i64, scratch_operands = 0 : i64, tpu.core_type = #tpu.core_type<tc>} {
    %0 = tpu.iota {dimensions = array<i32: 1>} : vector<16x80xi32>
    %1 = tpu.iota {dimensions = array<i32: 0>} : vector<16x1xi32>
    %c7_i32 = arith.constant 7 : i32
    %2 = vector.broadcast %c7_i32 : i32 to vector<16x1xi32>
    %3 = arith.andi %1, %2 : vector<16x1xi32>
    %c0 = arith.constant 0 : index
    %c0_0 = arith.constant 0 : index
    %4 = vector.load %arg0[%c0, %c0_0] : memref<16x1xi32, #tpu.memory_space<vmem>>, vector<16x1xi32>
    %c0_1 = arith.constant 0 : index
    %c0_2 = arith.constant 0 : index
    %5 = vector.load %arg1[%c0_1, %c0_2] : memref<16x1xi32, #tpu.memory_space<vmem>>, vector<16x1xi32>
    %6 = vector.broadcast %4 : vector<16x1xi32> to vector<16x80xi32>
    %7 = arith.cmpi eq, %0, %6 : vector<16x80xi32>
    %c64_i32 = arith.constant 64 : i32
    %8 = vector.broadcast %c64_i32 : i32 to vector<16x1xi32>
    %9 = arith.addi %5, %8 : vector<16x1xi32>
    %10 = vector.broadcast %9 : vector<16x1xi32> to vector<16x80xi32>
    %11 = arith.cmpi eq, %0, %10 : vector<16x80xi32>
    %12 = arith.ori %7, %11 : vector<16x80xi1>
    %c64_i32_3 = arith.constant 64 : i32
    %13 = vector.broadcast %c64_i32_3 : i32 to vector<16x1xi32>
    %14 = arith.addi %3, %13 : vector<16x1xi32>
    %c8_i32 = arith.constant 8 : i32
    %15 = vector.broadcast %c8_i32 : i32 to vector<16x1xi32>
    %16 = arith.addi %14, %15 : vector<16x1xi32>
    %17 = vector.broadcast %16 : vector<16x1xi32> to vector<16x80xi32>
    %18 = arith.cmpi eq, %0, %17 : vector<16x80xi32>
    %19 = arith.ori %12, %18 : vector<16x80xi1>
    %20 = arith.extui %19 : vector<16x80xi1> to vector<16x80xi32>
    %21 = arith.sitofp %20 : vector<16x80xi32> to vector<16x80xf32>
    %22 = arith.truncf %21 : vector<16x80xf32> to vector<16x80xbf16>
    %c0_4 = arith.constant 0 : index
    %c0_5 = arith.constant 0 : index
    %23 = vector.load %arg3[%c0_4, %c0_5] : memref<80x32xbf16, #tpu.memory_space<vmem>>, vector<80x32xbf16>
    %cst = arith.constant dense<0.000000e+00> : vector<16x32xf32>
    %24 = tpu.matmul %22, %23, %cst {dimension_numbers = #tpu.dot_dimension_numbers<[1], [0], [0], [1], [0, 0, 1, 1], [], []>} : vector<16x80xbf16>, vector<80x32xbf16>, vector<16x32xf32> -> vector<16x32xf32>
    %25 = arith.truncf %24 : vector<16x32xf32> to vector<16x32xbf16>
    %c0_6 = arith.constant 0 : index
    %c0_7 = arith.constant 0 : index
    %26 = vector.load %arg4[%c0_6, %c0_7] : memref<160x128xbf16, #tpu.memory_space<vmem>>, vector<32x32xbf16>
    %c0_8 = arith.constant 0 : index
    %c32 = arith.constant 32 : index
    %27 = vector.load %arg4[%c0_8, %c32] : memref<160x128xbf16, #tpu.memory_space<vmem>>, vector<32x32xbf16>
    %c0_9 = arith.constant 0 : index
    %c64 = arith.constant 64 : index
    %28 = vector.load %arg4[%c0_9, %c64] : memref<160x128xbf16, #tpu.memory_space<vmem>>, vector<32x32xbf16>
    %c0_10 = arith.constant 0 : index
    %c96 = arith.constant 96 : index
    %29 = vector.load %arg4[%c0_10, %c96] : memref<160x128xbf16, #tpu.memory_space<vmem>>, vector<32x32xbf16>
    %c32_11 = arith.constant 32 : index
    %c0_12 = arith.constant 0 : index
    %30 = vector.load %arg4[%c32_11, %c0_12] : memref<160x128xbf16, #tpu.memory_space<vmem>>, vector<32x128xbf16>
    %c64_13 = arith.constant 64 : index
    %c0_14 = arith.constant 0 : index
    %31 = vector.load %arg4[%c64_13, %c0_14] : memref<160x128xbf16, #tpu.memory_space<vmem>>, vector<32x128xbf16>
    %c96_15 = arith.constant 96 : index
    %c0_16 = arith.constant 0 : index
    %32 = vector.load %arg4[%c96_15, %c0_16] : memref<160x128xbf16, #tpu.memory_space<vmem>>, vector<32x128xbf16>
    %c128 = arith.constant 128 : index
    %c0_17 = arith.constant 0 : index
    %33 = vector.load %arg4[%c128, %c0_17] : memref<160x128xbf16, #tpu.memory_space<vmem>>, vector<32x32xbf16>
    %c0_18 = arith.constant 0 : index
    %c0_19 = arith.constant 0 : index
    %34 = vector.load %arg5[%c0_18, %c0_19] : memref<16x128xf32, #tpu.memory_space<vmem>>, vector<1x32xf32>
    %c1 = arith.constant 1 : index
    %c0_20 = arith.constant 0 : index
    %35 = vector.load %arg5[%c1, %c0_20] : memref<16x128xf32, #tpu.memory_space<vmem>>, vector<1x32xf32>
    %c2 = arith.constant 2 : index
    %c0_21 = arith.constant 0 : index
    %36 = vector.load %arg5[%c2, %c0_21] : memref<16x128xf32, #tpu.memory_space<vmem>>, vector<1x32xf32>
    %c3 = arith.constant 3 : index
    %c0_22 = arith.constant 0 : index
    %37 = vector.load %arg5[%c3, %c0_22] : memref<16x128xf32, #tpu.memory_space<vmem>>, vector<1x32xf32>
    %c4 = arith.constant 4 : index
    %c0_23 = arith.constant 0 : index
    %38 = vector.load %arg5[%c4, %c0_23] : memref<16x128xf32, #tpu.memory_space<vmem>>, vector<1x32xf32>
    %c5 = arith.constant 5 : index
    %c0_24 = arith.constant 0 : index
    %39 = vector.load %arg5[%c5, %c0_24] : memref<16x128xf32, #tpu.memory_space<vmem>>, vector<1x32xf32>
    %c6 = arith.constant 6 : index
    %c0_25 = arith.constant 0 : index
    %40 = vector.load %arg5[%c6, %c0_25] : memref<16x128xf32, #tpu.memory_space<vmem>>, vector<1x128xf32>
    %c7 = arith.constant 7 : index
    %c0_26 = arith.constant 0 : index
    %41 = vector.load %arg5[%c7, %c0_26] : memref<16x128xf32, #tpu.memory_space<vmem>>, vector<1x32xf32>
    %c8 = arith.constant 8 : index
    %c0_27 = arith.constant 0 : index
    %42 = vector.load %arg5[%c8, %c0_27] : memref<16x128xf32, #tpu.memory_space<vmem>>, vector<1x32xf32>
    %c9 = arith.constant 9 : index
    %c0_28 = arith.constant 0 : index
    %43 = vector.load %arg5[%c9, %c0_28] : memref<16x128xf32, #tpu.memory_space<vmem>>, vector<1x32xf32>
    %c10 = arith.constant 10 : index
    %c0_29 = arith.constant 0 : index
    %44 = vector.load %arg5[%c10, %c0_29] : memref<16x128xf32, #tpu.memory_space<vmem>>, vector<1x32xf32>
    %c11 = arith.constant 11 : index
    %c0_30 = arith.constant 0 : index
    %45 = vector.load %arg5[%c11, %c0_30] : memref<16x128xf32, #tpu.memory_space<vmem>>, vector<1x128xf32>
    %cst_31 = arith.constant dense<0.000000e+00> : vector<16x32xf32>
    %46 = tpu.matmul %25, %27, %cst_31 {dimension_numbers = #tpu.dot_dimension_numbers<[1], [0], [0], [1], [0, 0, 1, 1], [], []>} : vector<16x32xbf16>, vector<32x32xbf16>, vector<16x32xf32> -> vector<16x32xf32>
    %47 = vector.broadcast %35 : vector<1x32xf32> to vector<16x32xf32>
    %48 = arith.addf %46, %47 : vector<16x32xf32>
    %cst_32 = arith.constant dense<0.000000e+00> : vector<16x32xf32>
    %49 = tpu.matmul %25, %28, %cst_32 {dimension_numbers = #tpu.dot_dimension_numbers<[1], [0], [0], [1], [0, 0, 1, 1], [], []>} : vector<16x32xbf16>, vector<32x32xbf16>, vector<16x32xf32> -> vector<16x32xf32>
    %50 = vector.broadcast %36 : vector<1x32xf32> to vector<16x32xf32>
    %51 = arith.addf %49, %50 : vector<16x32xf32>
    %52 = tpu.iota {dimensions = array<i32: 0>} : vector<8x16xi32>
    %53 = tpu.iota {dimensions = array<i32: 1>} : vector<8x16xi32>
    %c8_i32_33 = arith.constant 8 : i32
    %54 = vector.broadcast %c8_i32_33 : i32 to vector<8x16xi32>
    %55 = arith.muli %52, %54 : vector<8x16xi32>
    %56 = arith.cmpi eq, %53, %55 : vector<8x16xi32>
    %c2_i32 = arith.constant 2 : i32
    %57 = vector.broadcast %c2_i32 : i32 to vector<8x16xi32>
    %58 = arith.cmpi slt, %52, %57 : vector<8x16xi32>
    %59 = arith.andi %56, %58 : vector<8x16xi1>
    %60 = arith.extui %59 : vector<8x16xi1> to vector<8x16xi32>
    %61 = arith.sitofp %60 : vector<8x16xi32> to vector<8x16xf32>
    %62 = arith.truncf %61 : vector<8x16xf32> to vector<8x16xbf16>
    %cst_34 = arith.constant dense<0.000000e+00> : vector<8x32xf32>
    %63 = tpu.matmul %62, %25, %cst_34 {dimension_numbers = #tpu.dot_dimension_numbers<[1], [0], [0], [1], [0, 0, 1, 1], [], []>} : vector<8x16xbf16>, vector<16x32xbf16>, vector<8x32xf32> -> vector<8x32xf32>
    %64 = arith.truncf %63 : vector<8x32xf32> to vector<8x32xbf16>
    %cst_35 = arith.constant dense<0.000000e+00> : vector<8x32xf32>
    %65 = tpu.matmul %64, %26, %cst_35 {dimension_numbers = #tpu.dot_dimension_numbers<[1], [0], [0], [1], [0, 0, 1, 1], [], []>} : vector<8x32xbf16>, vector<32x32xbf16>, vector<8x32xf32> -> vector<8x32xf32>
    %66 = vector.broadcast %34 : vector<1x32xf32> to vector<8x32xf32>
    %67 = arith.addf %65, %66 : vector<8x32xf32>
    %cst_36 = arith.constant dense<0.000000e+00> : vector<8x16xf32>
    %68 = tpu.matmul %67, %48, %cst_36 {dimension_numbers = #tpu.dot_dimension_numbers<[1], [1], [0], [0], [0, 0, 1, 0], [], []>} : vector<8x32xf32>, vector<16x32xf32>, vector<8x16xf32> -> vector<8x16xf32>
    %cst_37 = arith.constant 0.176776692 : f32
    %69 = vector.broadcast %cst_37 : f32 to vector<8x16xf32>
    %70 = arith.mulf %68, %69 : vector<8x16xf32>
    %c8_i32_38 = arith.constant 8 : i32
    %71 = vector.broadcast %c8_i32_38 : i32 to vector<8x16xi32>
    %72 = arith.muli %52, %71 : vector<8x16xi32>
    %c0_39 = arith.constant 0 : index
    %c0_40 = arith.constant 0 : index
    %73 = vector.load %arg2[%c0_39, %c0_40] : memref<8x1xi32, #tpu.memory_space<vmem>>, vector<8x1xi32>
    %74 = arith.cmpi sge, %53, %72 : vector<8x16xi32>
    %75 = vector.broadcast %73 : vector<8x1xi32> to vector<8x16xi32>
    %76 = arith.addi %72, %75 : vector<8x16xi32>
    %77 = arith.cmpi slt, %53, %76 : vector<8x16xi32>
    %78 = arith.andi %74, %77 : vector<8x16xi1>
    %cst_41 = arith.constant -1.000000e+09 : f32
    %79 = vector.broadcast %cst_41 : f32 to vector<8x16xf32>
    %80 = arith.select %78, %70, %79 : vector<8x16xi1>, vector<8x16xf32>
    %cst_42 = arith.constant dense<0xFF800000> : vector<8xf32>
    %81 = vector.multi_reduction <maximumf>, %80, %cst_42 [1] : vector<8x16xf32> to vector<8xf32>
    %82 = vector.shape_cast %81 : vector<8xf32> to vector<8x1xf32>
    %83 = vector.broadcast %82 : vector<8x1xf32> to vector<8x16xf32>
    %84 = arith.subf %80, %83 : vector<8x16xf32>
    %85 = math.exp %84 : vector<8x16xf32>
    %cst_43 = arith.constant dense<0.000000e+00> : vector<8xf32>
    %86 = vector.multi_reduction <add>, %85, %cst_43 [1] : vector<8x16xf32> to vector<8xf32>
    %87 = vector.shape_cast %86 : vector<8xf32> to vector<8x1xf32>
    %88 = tpu.reciprocal %87 {approx = true} : vector<8x1xf32> -> vector<8x1xf32>
    %89 = vector.broadcast %88 : vector<8x1xf32> to vector<8x16xf32>
    %90 = arith.mulf %85, %89 : vector<8x16xf32>
    %cst_44 = arith.constant dense<0.000000e+00> : vector<8x32xf32>
    %91 = tpu.matmul %90, %51, %cst_44 {dimension_numbers = #tpu.dot_dimension_numbers<[1], [0], [0], [1], [0, 0, 1, 1], [], []>} : vector<8x16xf32>, vector<16x32xf32>, vector<8x32xf32> -> vector<8x32xf32>
    %92 = arith.truncf %91 : vector<8x32xf32> to vector<8x32xbf16>
    %cst_45 = arith.constant dense<0.000000e+00> : vector<8x32xf32>
    %93 = tpu.matmul %92, %29, %cst_45 {dimension_numbers = #tpu.dot_dimension_numbers<[1], [0], [0], [1], [0, 0, 1, 1], [], []>} : vector<8x32xbf16>, vector<32x32xbf16>, vector<8x32xf32> -> vector<8x32xf32>
    %94 = vector.broadcast %37 : vector<1x32xf32> to vector<8x32xf32>
    %95 = arith.addf %93, %94 : vector<8x32xf32>
    %96 = arith.addf %63, %95 : vector<8x32xf32>
    %cst_46 = arith.constant dense<0.000000e+00> : vector<8xf32>
    %97 = vector.multi_reduction <add>, %96, %cst_46 [1] : vector<8x32xf32> to vector<8xf32>
    %98 = vector.shape_cast %97 : vector<8xf32> to vector<8x1xf32>
    %cst_47 = arith.constant 3.200000e+01 : f32
    %99 = vector.broadcast %cst_47 : f32 to vector<8x1xf32>
    %100 = arith.divf %98, %99 : vector<8x1xf32>
    %101 = vector.broadcast %100 : vector<8x1xf32> to vector<8x32xf32>
    %102 = arith.subf %96, %101 : vector<8x32xf32>
    %103 = arith.mulf %102, %102 : vector<8x32xf32>
    %cst_48 = arith.constant dense<0.000000e+00> : vector<8xf32>
    %104 = vector.multi_reduction <add>, %103, %cst_48 [1] : vector<8x32xf32> to vector<8xf32>
    %105 = vector.shape_cast %104 : vector<8xf32> to vector<8x1xf32>
    %cst_49 = arith.constant 3.200000e+01 : f32
    %106 = vector.broadcast %cst_49 : f32 to vector<8x1xf32>
    %107 = arith.divf %105, %106 : vector<8x1xf32>
    %108 = vector.broadcast %100 : vector<8x1xf32> to vector<8x32xf32>
    %109 = arith.subf %96, %108 : vector<8x32xf32>
    %cst_50 = arith.constant 9.99999996E-13 : f32
    %110 = vector.broadcast %cst_50 : f32 to vector<8x1xf32>
    %111 = arith.addf %107, %110 : vector<8x1xf32>
    %112 = math.rsqrt %111 : vector<8x1xf32>
    %113 = vector.broadcast %112 : vector<8x1xf32> to vector<8x32xf32>
    %114 = arith.mulf %109, %113 : vector<8x32xf32>
    %115 = vector.broadcast %38 : vector<1x32xf32> to vector<8x32xf32>
    %116 = arith.mulf %114, %115 : vector<8x32xf32>
    %117 = vector.broadcast %39 : vector<1x32xf32> to vector<8x32xf32>
    %118 = arith.addf %116, %117 : vector<8x32xf32>
    %119 = arith.truncf %118 : vector<8x32xf32> to vector<8x32xbf16>
    %cst_51 = arith.constant dense<0.000000e+00> : vector<8x128xf32>
    %120 = tpu.matmul %119, %30, %cst_51 {dimension_numbers = #tpu.dot_dimension_numbers<[1], [0], [0], [1], [0, 0, 1, 1], [], []>} : vector<8x32xbf16>, vector<32x128xbf16>, vector<8x128xf32> -> vector<8x128xf32>
    %121 = vector.broadcast %40 : vector<1x128xf32> to vector<8x128xf32>
    %122 = arith.addf %120, %121 : vector<8x128xf32>
    %123 = arith.mulf %122, %122 : vector<8x128xf32>
    %124 = arith.mulf %122, %123 : vector<8x128xf32>
    %cst_52 = arith.constant 4.471500e-02 : f32
    %125 = vector.broadcast %cst_52 : f32 to vector<8x128xf32>
    %126 = arith.mulf %125, %124 : vector<8x128xf32>
    %127 = arith.addf %122, %126 : vector<8x128xf32>
    %cst_53 = arith.constant 0.797884583 : f32
    %128 = vector.broadcast %cst_53 : f32 to vector<8x128xf32>
    %129 = arith.mulf %128, %127 : vector<8x128xf32>
    %130 = math.tanh %129 : vector<8x128xf32>
    %cst_54 = arith.constant 1.000000e+00 : f32
    %131 = vector.broadcast %cst_54 : f32 to vector<8x128xf32>
    %132 = arith.addf %131, %130 : vector<8x128xf32>
    %cst_55 = arith.constant 5.000000e-01 : f32
    %133 = vector.broadcast %cst_55 : f32 to vector<8x128xf32>
    %134 = arith.mulf %133, %132 : vector<8x128xf32>
    %135 = arith.mulf %122, %134 : vector<8x128xf32>
    %136 = arith.truncf %135 : vector<8x128xf32> to vector<8x128xbf16>
    %cst_56 = arith.constant dense<0.000000e+00> : vector<8x32xf32>
    %137 = tpu.matmul %136, %31, %cst_56 {dimension_numbers = #tpu.dot_dimension_numbers<[1], [1], [0], [0], [0, 0, 1, 0], [], []>} : vector<8x128xbf16>, vector<32x128xbf16>, vector<8x32xf32> -> vector<8x32xf32>
    %138 = vector.broadcast %41 : vector<1x32xf32> to vector<8x32xf32>
    %139 = arith.addf %137, %138 : vector<8x32xf32>
    %140 = arith.addf %118, %139 : vector<8x32xf32>
    %cst_57 = arith.constant dense<0.000000e+00> : vector<8xf32>
    %141 = vector.multi_reduction <add>, %140, %cst_57 [1] : vector<8x32xf32> to vector<8xf32>
    %142 = vector.shape_cast %141 : vector<8xf32> to vector<8x1xf32>
    %cst_58 = arith.constant 3.200000e+01 : f32
    %143 = vector.broadcast %cst_58 : f32 to vector<8x1xf32>
    %144 = arith.divf %142, %143 : vector<8x1xf32>
    %145 = vector.broadcast %144 : vector<8x1xf32> to vector<8x32xf32>
    %146 = arith.subf %140, %145 : vector<8x32xf32>
    %147 = arith.mulf %146, %146 : vector<8x32xf32>
    %cst_59 = arith.constant dense<0.000000e+00> : vector<8xf32>
    %148 = vector.multi_reduction <add>, %147, %cst_59 [1] : vector<8x32xf32> to vector<8xf32>
    %149 = vector.shape_cast %148 : vector<8xf32> to vector<8x1xf32>
    %cst_60 = arith.constant 3.200000e+01 : f32
    %150 = vector.broadcast %cst_60 : f32 to vector<8x1xf32>
    %151 = arith.divf %149, %150 : vector<8x1xf32>
    %152 = vector.broadcast %144 : vector<8x1xf32> to vector<8x32xf32>
    %153 = arith.subf %140, %152 : vector<8x32xf32>
    %cst_61 = arith.constant 9.99999996E-13 : f32
    %154 = vector.broadcast %cst_61 : f32 to vector<8x1xf32>
    %155 = arith.addf %151, %154 : vector<8x1xf32>
    %156 = math.rsqrt %155 : vector<8x1xf32>
    %157 = vector.broadcast %156 : vector<8x1xf32> to vector<8x32xf32>
    %158 = arith.mulf %153, %157 : vector<8x32xf32>
    %159 = vector.broadcast %42 : vector<1x32xf32> to vector<8x32xf32>
    %160 = arith.mulf %158, %159 : vector<8x32xf32>
    %161 = vector.broadcast %43 : vector<1x32xf32> to vector<8x32xf32>
    %162 = arith.addf %160, %161 : vector<8x32xf32>
    %163 = arith.truncf %162 : vector<8x32xf32> to vector<8x32xbf16>
    %cst_62 = arith.constant dense<0.000000e+00> : vector<8x32xf32>
    %164 = tpu.matmul %163, %33, %cst_62 {dimension_numbers = #tpu.dot_dimension_numbers<[1], [0], [0], [1], [0, 0, 1, 1], [], []>} : vector<8x32xbf16>, vector<32x32xbf16>, vector<8x32xf32> -> vector<8x32xf32>
    %165 = vector.broadcast %44 : vector<1x32xf32> to vector<8x32xf32>
    %166 = arith.addf %164, %165 : vector<8x32xf32>
    %167 = math.tanh %166 : vector<8x32xf32>
    %168 = arith.truncf %167 : vector<8x32xf32> to vector<8x32xbf16>
    %cst_63 = arith.constant dense<0.000000e+00> : vector<8x128xf32>
    %169 = tpu.matmul %168, %32, %cst_63 {dimension_numbers = #tpu.dot_dimension_numbers<[1], [0], [0], [1], [0, 0, 1, 1], [], []>} : vector<8x32xbf16>, vector<32x128xbf16>, vector<8x128xf32> -> vector<8x128xf32>
    %170 = vector.broadcast %45 : vector<1x128xf32> to vector<8x128xf32>
    %171 = arith.addf %169, %170 : vector<8x128xf32>
    %c0_64 = arith.constant 0 : index
    %c0_65 = arith.constant 0 : index
    %172 = vector.load %arg6[%c0_64, %c0_65] : memref<8x128xf32, #tpu.memory_space<vmem>>, vector<8x128xf32>
    tpu.vector_store %arg6[%c0_64, %c0_65], %171 {strides = array<i32>} : memref<8x128xf32, #tpu.memory_space<vmem>>, vector<8x128xf32>,
    return
  }
}

</mosaic_0001>

<bundles_post_ra>
// kernel: bert_classifier_forward.1
= control target key start
LH: loop header
LB: loop body
LE: loop exit
PB: predicated region body
PF: predicated region fallthrough
CT: control target
= control target key end

     0   :  { %v1153_v0 = vmov 0   ;;  %v1154_v5 = vmov 0.0   ;;  %vm1156_vm0 = vmmov 0   ;;  %s1157_s14 = smov 64   ;;  %v24_v16 = vlaneseq  ;;  %s1159_s25 = smov 32   ;;  %s1389_s0 = inlined_call_operand.vmem [shape: s32[16,1], index: 0, kind: input, shape index: {}]   ;;  %s1390_s1 = inlined_call_operand.vmem [shape: s32[16,1], index: 1, kind: input, shape index: {}]   ;;  %s1391_s4 = inlined_call_operand.vmem [shape: bf16[160,128], index: 4, kind: input, shape index: {}]   ;;  %s1392_s3 = inlined_call_operand.vmem [shape: bf16[80,32], index: 3, kind: input, shape index: {}]   ;;  %s1393_s2 = inlined_call_operand.vmem [shape: s32[8,1], index: 2, kind: input, shape index: {}]   ;;  %s1394_s5 = inlined_call_operand.vmem [shape: f32[16,128], index: 5, kind: input, shape index: {}]   ;;  %s1395_s6 = inlined_call_operand.vmem [shape: f32[8,128], index: 6, kind: output, shape index: {}]  }
   0x1   :  { %1124 = vset.pattern.permute.xlu0 %v1153_v0  ;;  %v31_v1 = vld [vmem:[%s1389_s0] sm:$0xff]  ;;  %1125 = vset.pattern.permute.xlu1 %v1153_v0  ;;  %v34_v3 = vld [vmem:[%s1390_s1 + $0x8] sm:$0xff]  ;;  %v1129_v11 = vld [vmem:[%s1392_s3 + $0x10] sm:$0xff]   ;;  %vm108_vm11 = vcmask 654336   ;;  %vm206_vm12 = vcmask 261120   ;;  %v1158_v45 = vmov 0.0|0.0  }
   0x2   :  { %v33_v2 = vld [vmem:[%s1390_s1] sm:$0xff]  ;;  %36 = vperm.xlu0 %1124, %v31_v1   ;;  %1012 = vmatprep.subr.bf16.mxu0 %v1154_v5  ;;  %v32_v6 = vld [vmem:[%s1389_s0 + $0x8] sm:$0xff]  ;;  %v44_v7 = vadd.s32 64, %v34_v3  ;;  %s1155_s0 = smov 96   ;;  %v1130_v13 = vld [vmem:[%s1392_s3 + $0x18] sm:$0xff]   ;;  %v27_v17 = vshrl.u32 %v24_v16, 7 }
   0x3   :  { %v43_v4 = vadd.s32 64, %v33_v2  ;;  %1026 = vmatprep.subr.bf16.mxu1 %v1154_v5  ;;  %v1127_v8 = vld [vmem:[%s1392_s3] sm:$0xff]   ;;  %v1128_v10 = vld [vmem:[%s1392_s3 + $0x8] sm:$0xff]   ;;  %1022 = vmatprep.mubr.msk.bf16.mxu0 %vm1156_vm0, %v1154_v5  ;;  %v1250_v22 = vand.u32 127, %v24_v16 }
   0x4   :  { %v1215_v9 = vld [vmem:[%s1391_s4] sm:$0xff]   ;;  %1013 = vmatpush3.bf16.msra.mxu0 %v1127_v8  ;;  %1030 = vmatprep.mubr.msk.bf16.mxu1 %vm1156_vm0, %v1154_v5  ;;  %v1245_v15 = vld [vmem:[%s1391_s4 + $0x8] sm:$0xff]   ;;  %v28_v18 = vadd.s32 8, %v27_v17  ;;  %v29_v19 = vand.u32 7, %v27_v17  ;;  %v1268_v41 = vmul.u32 8, %v27_v17  ;;  %vm304_vm14 = vcmp.lt.s32.totalorder %v27_v17, 2 }
   0x5   :  { %46 = vperm.xlu1 %1125, %v43_v4   ;;  %1014 = vmatprep.subr.bf16.mxu0 %v1154_v5  ;;  %v483_v12 = vld [vmem:[%s1393_s2] sm:$0xff] }
   0x6   :  { %39 = vperm.xlu0 %1124, %v32_v6   ;;  %v1131_v14 = vld [vmem:[%s1392_s3 + $0x20] sm:$0xff]   ;;  %v30_v20 = vand.u32 7, %v28_v18  ;;  %v55_v21 = vadd.s32 64, %v29_v19  ;;  %vm303_vm13 = vcmp.eq.s32.totalorder %v1250_v22, %v1268_v41 }
   0x7   :  { %vm305_vm15 = vmand %vm303_vm13, %vm304_vm14  ;;  %v939_v46 = vld [vmem:[%s1394_s5 + $0x1] ss:$0 sm:$0xff]  ;;  %v943_v54 = vld [vmem:[%s1394_s5 + $0x2] ss:$0 sm:$0xff] }
   0x8   :  { %1015 = vmatpush3.bf16.msra.mxu0 %v1128_v10  ;;  %v56_v23 = vadd.s32 64, %v30_v20  ;;  %v57_v25 = vadd.s32 8, %v55_v21  ;;  %v945_v43 = vsel %vm305_vm15, 1.0, %v1154_v5  ;;  %v947_v3 = vld [vmem:[%s1394_s5] ss:$0 sm:$0xff] }
   0x9   :  { %49 = vperm.xlu1 %1125, %v44_v7   ;;  %1016 = vmatprep.subr.bf16.mxu0 %v1154_v5  ;;  %v308_v44 = vpack.c.bf16 %v945_v43, %v945_v43  ;;  %v1133_v43 = vld [vmem:[%s1391_s4 + $0x10] sm:$0xff]  }
   0xa   :  { %200 = vrot.lane.b32.xlu0 %v1215_v9, %s1155_s0  ;;  %v58_v27 = vadd.s32 8, %v56_v23  ;;  %vm59_vm3 = vcmp.eq.s32.totalorder %v1250_v22, %v57_v25 }
   0xc   :  { %1017 = vmatpush3.bf16.msra.mxu0 %v1129_v11  ;;  %vm60_vm5 = vcmp.eq.s32.totalorder %v1250_v22, %v58_v27 }
   0xd   :  { %1018 = vmatprep.subr.bf16.mxu0 %v1154_v5  ;;  %202 = vrot.lane.b32.xlu1 %v1245_v15, %s1155_s0 }
   0xe   :  { %255 = vrot.lane.b32.xlu0 %v1215_v9, %s1157_s14 }
  0x10   :  { %1019 = vmatpush3.bf16.msra.mxu0 %v1130_v13 }
  0x11   :  { %1020 = vmatprep.subr.bf16.mxu0 %v1154_v5  ;;  %257 = vrot.lane.b32.xlu1 %v1245_v15, %s1157_s14 }
  0x12   :  { %486 = vperm.xlu0 %1124, %v483_v12  }
  0x14   :  { %1021 = vmatpush3.bf16.msra.mxu0 %v1131_v14 }
  0x15   :  { %1048 = vmatprep.subr.bf16.mxu0 %v1154_v5 }
  0x81   :  { %v37_v24 = vpop.permute.xlu0 %36 }
  0x82   :  { %vm41_vm1 = vcmp.eq.s32.totalorder %v1250_v22, %v37_v24 }
  0x84   :  { %v47_v26 = vpop.permute.xlu1 %46 }
  0x85   :  { %vm51_vm2 = vcmp.eq.s32.totalorder %v1250_v22, %v47_v26  ;;  %v40_v28 = vpop.permute.xlu0 %39 }
  0x86   :  { %vm53_vm4 = vmor %vm41_vm1, %vm51_vm2  ;;  %vm42_vm7 = vcmp.eq.s32.totalorder %v1250_v22, %v40_v28  ;;  %vm309_vm1 = vcmask 130048  }
  0x87   :  { %vm61_vm6 = vmor %vm53_vm4, %vm59_vm3  ;;  %vm484_vm4 = vcmp.ge.s32.totalorder %v1250_v22, %v1268_v41 }
  0x88   :  { %v50_v29 = vpop.permute.xlu1 %49  ;;  %v931_v31 = vsel %vm61_vm6, 1.0, %v1154_v5  ;;  %vm1112_vm2 = vmpackc.low %vm206_vm12, %vm206_vm12 }
  0x89   :  { %vm52_vm8 = vcmp.eq.s32.totalorder %v1250_v22, %v50_v29  ;;  %v201_v30 = vpop.permute.xlu0 %200 }
  0x8a   :  { %vm54_vm9 = vmor %vm42_vm7, %vm52_vm8  ;;  %1027 = vmatpush3.bf16.msra.mxu1 %v201_v30  ;;  %v953_v30 = vld [vmem:[%s1394_s5 + $0x3] ss:$0 sm:$0xff] }
  0x8b   :  { %vm62_vm10 = vmor %vm54_vm9, %vm60_vm5  ;;  %1028 = vmatprep.subr.bf16.mxu1 %v1154_v5 }
  0x8c   :  { %v932_v32 = vsel %vm62_vm10, 1.0, %v1154_v5  ;;  %v203_v33 = vpop.permute.xlu1 %202 }
  0x8d   :  { %v67_v34 = vpack.c.bf16 %v932_v32, %v931_v31  ;;  %v256_v40 = vpop.permute.xlu0 %255 }
  0x8e   :  { %1029 = vmatpush3.bf16.msra.mxu1 %v203_v33 }
  0x8f   :  { %1023 = vmatmul.mubr.msk.bf16.vlgmr.msra.gmra.mrb[0].mxu0 %vm108_vm11, %v67_v34  ;;  %1034 = vmatprep.subr.bf16.mxu1 %v1154_v5 }
  0x90   :  { %1049 = vmatpush3.bf16.msra.mxu0 %v1215_v9  ;;  %1052 = vmatprep.mubr.msk.bf16.mxu0 %vm1156_vm0, %v1154_v5  ;;  %v258_v42 = vpop.permute.xlu1 %257 }
  0x91   :  { %1050 = vmatprep.subr.bf16.mxu0 %v1154_v5  ;;  %v487_v11 = vpop.permute.xlu0 %486 }
  0x92   :  { %v488_v12 = vadd.s32 %v487_v11, %v1268_v41  ;;  %v961_v11 = vld [vmem:[%s1394_s5 + $0x7] ss:$0 sm:$0xff] }
  0x94   :  { %1051 = vmatpush3.bf16.msra.mxu0 %v1245_v15  ;;  %vm489_vm3 = vcmp.lt.s32.totalorder %v1250_v22, %v488_v12 }
  0x95   :  { %1114 = vmatprep.subr.bf16.mxu0 %v1158_v45  ;;  %vm490_vm5 = vmand %vm484_vm4, %vm489_vm3 }
 0x162   :  { %v146_v35 = vpop.f32.mrb[0].mxu0 }
 0x163   :  { %v1024_v36 = vpop.f32.mrb[1].mxu0 }
 0x164   :  { %v149_v37 = vpop.f32.mrb[2].mxu0 }
 0x165   :  { %v153_v38 = vpack.c.bf16 %v149_v37, %v146_v35  ;;  %v1025_v39 = vpop.f32.mrb[3].mxu0 }
 0x167   :  { %1031 = vmatmul.mubr.msk.bf16.vlgmr.msra.gmra.mrb[0].mxu1 %vm206_vm12, %v153_v38 }
 0x168   :  { %1035 = vmatpush3.bf16.msra.mxu1 %v256_v40  ;;  %1038 = vmatprep.mubr.msk.bf16.mxu1 %vm1156_vm0, %v1154_v5 }
 0x169   :  { %1036 = vmatprep.subr.bf16.mxu1 %v1154_v5 }
 0x16c   :  { %1037 = vmatpush3.bf16.msra.mxu1 %v258_v42 }
 0x16d   :  { %1042 = vmatprep.subr.bf16.mxu1 %v1154_v5 }
 0x16f   :  { %1039 = vmatmul.mubr.msk.bf16.vlgmr.msra.gmra.mrb[4].mxu1 %vm206_vm12, %v153_v38 }
 0x170   :  { %1043 = vmatpush3.bf16.msra.mxu1 %v153_v38  ;;  %1044 = vmatprep.mubr.msk.bf16.mxu1 %vm1156_vm0, %v1154_v5 }
 0x171   :  { %1110 = vmatprep.subr.bf16.mxu1 %v1158_v45 }
 0x177   :  { %1045 = vmatmul.mubr.msk.bf16.vlgmr.msra.gmra.mrb[8].mxu1 %vm309_vm1, %v308_v44  ;;  %v1134_v44 = vld [vmem:[%s1391_s4 + $0x18] sm:$0xff]  }
 0x178   :  { %1060 = vmatprep.mubr.msk.f32.mxu1 %vm1156_vm0, %v1154_v5 }
 0x23a   :  { %v244_v47 = vpop.f32.mrb[0].mxu1 }
 0x23b   :  { %v1032_v48 = vpop.f32.mrb[1].mxu1  ;;  %v245_v50 = vadd.f32 %v939_v46, %v244_v47 }
 0x23c   :  { %v247_v49 = vpop.f32.mrb[2].mxu1 }
 0x23d   :  { %v248_v51 = vadd.f32 %v939_v46, %v247_v49  ;;  %v1033_v52 = vpop.f32.mrb[3].mxu1  ;;  %v955_v49 = vld [vmem:[%s1394_s5 + $0x4] ss:$0 sm:$0xff] }
 0x23f   :  { %v1111_v53 = vpack.c.bf16 %v248_v51, %v245_v50  ;;  %v956_v51 = vld [vmem:[%s1394_s5 + $0x5] ss:$0 sm:$0xff] }
 0x241   :  { %1113 = vmatpush3.bf16.xpose.msk.msra.mxu1 %vm1112_vm2, %v1111_v53 }
 0x242   :  { %v295_v55 = vpop.f32.mrb[4].mxu1  ;;  %1070 = vmatprep.subr.bf16.mxu1 %v1154_v5 }
 0x243   :  { %v1040_v56 = vpop.f32.mrb[5].mxu1  ;;  %v296_v58 = vadd.f32 %v943_v54, %v295_v55  ;;  %v1135_v55 = vld [vmem:[%s1391_s4 + $0x20] sm:$0xff]  }
 0x244   :  { %v298_v57 = vpop.f32.mrb[6].mxu1  ;;  %v1136_v56 = vld [vmem:[%s1391_s4 + $0x28] sm:$0xff]  }
 0x245   :  { %v299_v59 = vadd.f32 %v943_v54, %v298_v57  ;;  %v1041_v60 = vpop.f32.mrb[7].mxu1  ;;  %v957_v57 = vld [vmem:[%s1394_s5 + $0x6] ss:$0 sm:$0xff] }
 0x247   :  { %v1115_v61 = vpack.c.bf16 %v299_v59, %v296_v58 }
 0x24a   :  { %v347_v62 = vpop.f32.mrb[8].mxu1 }
 0x24b   :  { %v353_v63 = vpack.c.bf16 %v347_v62, %v347_v62  ;;  %v1046_v0 = vpop.f32.mrb[9].mxu1 }
 0x24c   :  { %v350_v1 = vpop.f32.mrb[10].mxu1 }
 0x24d   :  { %v1047_v2 = vpop.f32.mrb[11].mxu1  ;;  %1053 = vmatmul.mubr.msk.bf16.vlgmr.msra.gmra.mrb[4].mxu0 %vm206_vm12, %v353_v63 }
 0x24e   :  { %1116 = vmatpush3.bf16.msra.mxu0 %v1115_v61  ;;  %1067 = vmatprep.mubr.msk.f32.mxu0 %vm1156_vm0, %v1154_v5 }
 0x24f   :  { %1078 = vmatprep.subr.bf16.mxu0 %v1154_v5 }
 0x320   :  { %v397_v4 = vpop.f32.mrb[4].mxu0 }
 0x321   :  { %v398_v6 = vadd.f32 %v947_v3, %v397_v4  ;;  %v1054_v7 = vpop.f32.mrb[5].mxu0 }
 0x322   :  { %v400_v8 = vpop.f32.mrb[6].mxu0 }
 0x323   :  { %v1055_v10 = vpop.f32.mrb[7].mxu0  ;;  %1061 = vmatmul.mubr.msk.f32.vlgmr.msra.gmra.mrb[12].mxu1 %vm206_vm12, %v398_v6 }
 0x324   :  { %1074 = vmatprep.mubr.msk.bf16.mxu1 %vm1156_vm0, %v1154_v5 }
 0x3f6   :  { %v478_v13 = vpop.f32.mrb[12].mxu1 }
 0x3f7   :  { %v482_v14 = vmul.f32 0.17677669, %v478_v13  ;;  %v1062_v16 = vpop.f32.mrb[13].mxu1 }
 0x3f9   :  { %v491_v17 = vsel %vm490_vm5, %v482_v14, -1e+09 }
 0x3fa   :  { %v492_v18 = vsel %vm309_vm1, %v491_v17, -inf }
 0x3fb   :  { %493 = vmax.xlane.f32.xlu1 %v492_v18 }
 0x40c   :  { %583 = vrot.lane.b32.xlu1 %v1245_v15, %s1159_s25 }
 0x488   :  { %v494_v19 = vpop.xlane.xlu1 %493 }
 0x489   :  { %v495_v20 = vsub.f32 %v491_v17, %v494_v19 }
 0x48b   :  { %v496_v21 = vmul.f32 1.442695, %v495_v20 }
 0x48c   :  { %v584_v26 = vpop.permute.xlu1 %583 }
 0x48d   :  { %1141 = vpow2.f32 %v496_v21 }
 0x497   :  { %v1142_v23 = vpop.eup %1141 }
 0x498   :  { %v498_v24 = vsel %vm309_vm1, %v1142_v23, 0.0 }
 0x499   :  { %499 = vadd.xlane.f32.xlu0 %v498_v24 }
 0x4af   :  { %581 = vrot.lane.b32.xlu0 %v1215_v9, %s1159_s25 }
 0x526   :  { %v500_v22 = vpop.xlane.xlu0 %499 }
 0x527   :  { %1143 = vrcp.f32 %v500_v22 }
 0x52a   :  { %v582_v25 = vpop.permute.xlu0 %581 }
 0x52b   :  { %1071 = vmatpush3.bf16.msra.mxu1 %v582_v25  ;;  %v1137_v25 = vld [vmem:[%s1391_s4 + $0x40] sm:$0xff]  }
 0x52c   :  { %1072 = vmatprep.subr.bf16.mxu1 %v1154_v5 }
 0x52f   :  { %1073 = vmatpush3.bf16.msra.mxu1 %v584_v26  ;;  %v1138_v26 = vld [vmem:[%s1391_s4 + $0x48] sm:$0xff]  }
 0x530   :  { %1086 = vmatprep.subr.bf16.mxu1 %v1154_v5 }
 0x531   :  { %v1144_v27 = vpop.eup %1143 }
 0x532   :  { %v502_v28 = vmul.f32 %v1144_v27, %v1142_v23 }
 0x534   :  { %1068 = vmatmul.mubr.msk.f32.vlgmr.msra.gmra.mrb[8].mxu0 %vm309_vm1, %v502_v28 }
 0x535   :  { %1082 = vmatprep.mubr.msk.bf16.mxu0 %vm1156_vm0, %v1154_v5  ;;  %1079 = vmatpush3.bf16.msra.mxu0 %v1133_v43 }
 0x536   :  { %1080 = vmatprep.subr.bf16.mxu0 %v1154_v5 }
 0x539   :  { %1081 = vmatpush3.bf16.msra.mxu0 %v1134_v44 }
 0x53a   :  { %1094 = vmatprep.subr.bf16.mxu0 %v1154_v5 }
 0x607   :  { %v572_v9 = vpop.f32.mrb[8].mxu0 }
 0x608   :  { %v576_v29 = vpack.c.bf16 %v572_v9, %v572_v9  ;;  %v1069_v15 = vpop.f32.mrb[9].mxu0 }
 0x609   :  { %v964_v15 = vld [vmem:[%s1394_s5 + $0x8] ss:$0 sm:$0xff] }
 0x60a   :  { %1075 = vmatmul.mubr.msk.bf16.vlgmr.msra.gmra.mrb[16].mxu1 %vm206_vm12, %v576_v29 }
 0x60b   :  { %1090 = vmatprep.mubr.msk.bf16.mxu1 %vm1156_vm0, %v1154_v5  ;;  %1087 = vmatpush3.bf16.xpose.msra.mxu1 %v1135_v55 }
 0x60c   :  { %1088 = vmatprep.subr.bf16.mxu1 %v1154_v5 }
 0x613   :  { %1089 = vmatpush3.bf16.xpose.msra.mxu1 %v1136_v56 }
 0x6dd   :  { %v624_v31 = vpop.f32.mrb[16].mxu1 }
 0x6de   :  { %v625_v32 = vadd.f32 %v953_v30, %v624_v31  ;;  %v1076_v33 = vpop.f32.mrb[17].mxu1  ;;  %v965_v31 = vld [vmem:[%s1394_s5 + $0x9] ss:$0 sm:$0xff] }
 0x6df   :  { %v627_v34 = vpop.f32.mrb[18].mxu1 }
 0x6e0   :  { %v1077_v35 = vpop.f32.mrb[19].mxu1  ;;  %v630_v36 = vadd.f32 %v625_v32, %v347_v62 }
 0x6e1   :  { %v1139_v35 = vld [vmem:[%s1391_s4 + $0x30] sm:$0xff]  }
 0x6e2   :  { %v631_v37 = vsel %vm206_vm12, %v630_v36, 0.0 }
 0x6e3   :  { %632 = vadd.xlane.f32.xlu1 %v631_v37  ;;  %v966_v37 = vld [vmem:[%s1394_s5 + $0xa] ss:$0 sm:$0xff] }
 0x770   :  { %v633_v38 = vpop.xlane.xlu1 %632 }
 0x771   :  { %v635_v39 = vmul.f32 0.03125, %v633_v38 }
 0x773   :  { %v636_v40 = vsub.f32 %v630_v36, %v635_v39  ;;  %v1140_v36 = vld [vmem:[%s1391_s4 + $0x38] sm:$0xff]  }
 0x775   :  { %v637_v41 = vmul.f32 %v636_v40, %v636_v40 }
 0x777   :  { %v638_v42 = vsel %vm206_vm12, %v637_v41, 0.0 }
 0x778   :  { %639 = vadd.xlane.f32.xlu0 %v638_v42 }
 0x805   :  { %v640_v45 = vpop.xlane.xlu0 %639 }
 0x806   :  { %v641_v46 = vmul.f32 0.03125, %v640_v45 }
 0x808   :  { %v642_v47 = vadd.f32 1e-12, %v641_v46 }
 0x80a   :  { %1145 = vrsqrt.f32 %v642_v47 }
 0x814   :  { %v1146_v48 = vpop.eup %1145 }
 0x815   :  { %v644_v50 = vmul.f32 %v1146_v48, %v636_v40 }
 0x817   :  { %v649_v52 = vmul.f32 %v955_v49, %v644_v50 }
 0x819   :  { %v654_v53 = vadd.f32 %v956_v51, %v649_v52 }
 0x81b   :  { %v655_v54 = vpack.c.bf16 %v654_v53, %v654_v53 }
 0x81d   :  { %1083 = vmatmul.mubr.msk.bf16.vlgmr.msra.gmra.mrb[12].mxu0 %vm206_vm12, %v655_v54 }
 0x81e   :  { %1098 = vmatprep.mubr.msk.bf16.mxu0 %vm1156_vm0, %v1154_v5  ;;  %1095 = vmatpush3.bf16.msra.mxu0 %v1137_v25 }
 0x81f   :  { %1096 = vmatprep.subr.bf16.mxu0 %v1154_v5 }
 0x822   :  { %1097 = vmatpush3.bf16.msra.mxu0 %v1138_v26 }
 0x823   :  { %1102 = vmatprep.subr.bf16.mxu0 %v1154_v5 }
 0x8f0   :  { %v709_v58 = vpop.f32.mrb[12].mxu0 }
 0x8f1   :  { %v710_v59 = vadd.f32 %v957_v57, %v709_v58  ;;  %v1084_v60 = vpop.f32.mrb[13].mxu0 }
 0x8f2   :  { %v712_v61 = vpop.f32.mrb[14].mxu0 }
 0x8f3   :  { %v715_v62 = vmul.f32 %v710_v59, %v710_v59  ;;  %v1085_v63 = vpop.f32.mrb[15].mxu0 }
 0x8f5   :  { %v716_v0 = vmul.f32 %v715_v62, %v710_v59 }
 0x8f7   :  { %v717_v1 = vmul.f32 0.044715, %v716_v0 }
 0x8f9   :  { %v718_v2 = vadd.f32 %v717_v1, %v710_v59 }
 0x8fb   :  { %v719_v3 = vmul.f32 0.7978846, %v718_v2 }
 0x8fd   :  { %1147 = vtanh.f32 %v719_v3 }
 0x907   :  { %v1148_v4 = vpop.eup %1147 }
 0x908   :  { %v721_v6 = vadd.f32 1.0, %v1148_v4 }
 0x90a   :  { %v722_v7 = vmul.f32 0.5, %v721_v6 }
 0x90c   :  { %v723_v8 = vmul.f32 %v722_v7, %v710_v59 }
 0x90e   :  { %v724_v10 = vpack.c.bf16 %v723_v8, %v723_v8 }
 0x910   :  { %1091 = vmatmul.mubr.bf16.vlgmr.msra.gmra.mrb[20].mxu1 %v724_v10 }
 0x9e3   :  { %v775_v12 = vpop.f32.mrb[20].mxu1 }
 0x9e4   :  { %v776_v13 = vadd.f32 %v961_v11, %v775_v12  ;;  %v1092_v14 = vpop.f32.mrb[21].mxu1 }
 0x9e5   :  { %v778_v16 = vpop.f32.mrb[22].mxu1 }
 0x9e6   :  { %v1093_v17 = vpop.f32.mrb[23].mxu1  ;;  %v781_v18 = vadd.f32 %v776_v13, %v654_v53 }
 0x9e8   :  { %v782_v19 = vsel %vm206_vm12, %v781_v18, 0.0 }
 0x9e9   :  { %783 = vadd.xlane.f32.xlu0 %v782_v19 }
 0xa76   :  { %v784_v20 = vpop.xlane.xlu0 %783 }
 0xa77   :  { %v785_v21 = vmul.f32 0.03125, %v784_v20 }
 0xa79   :  { %v786_v23 = vsub.f32 %v781_v18, %v785_v21 }
 0xa7b   :  { %v787_v24 = vmul.f32 %v786_v23, %v786_v23 }
 0xa7d   :  { %v788_v22 = vsel %vm206_vm12, %v787_v24, 0.0 }
 0xa7e   :  { %789 = vadd.xlane.f32.xlu1 %v788_v22 }
 0xb0b   :  { %v790_v27 = vpop.xlane.xlu1 %789 }
 0xb0c   :  { %v791_v28 = vmul.f32 0.03125, %v790_v27 }
 0xb0e   :  { %v792_v9 = vadd.f32 1e-12, %v791_v28 }
 0xb10   :  { %1149 = vrsqrt.f32 %v792_v9 }
 0xb1a   :  { %v1150_v29 = vpop.eup %1149 }
 0xb1b   :  { %v794_v30 = vmul.f32 %v1150_v29, %v786_v23 }
 0xb1d   :  { %v799_v32 = vmul.f32 %v964_v15, %v794_v30 }
 0xb1f   :  { %v804_v33 = vadd.f32 %v965_v31, %v799_v32 }
 0xb21   :  { %v805_v34 = vpack.c.bf16 %v804_v33, %v804_v33 }
 0xb23   :  { %1099 = vmatmul.mubr.msk.bf16.vlgmr.msra.gmra.mrb[16].mxu0 %vm206_vm12, %v805_v34 }
 0xb24   :  { %1106 = vmatprep.mubr.msk.bf16.mxu0 %vm1156_vm0, %v1154_v5  ;;  %1103 = vmatpush3.bf16.msra.mxu0 %v1139_v35 }
 0xb25   :  { %1104 = vmatprep.subr.bf16.mxu0 %v1154_v5  ;;  %v970_v5 = vld [vmem:[%s1394_s5 + $0xb] ss:$0 sm:$0xff] }
 0xb28   :  { %1105 = vmatpush3.bf16.msra.mxu0 %v1140_v36 }
 0xbf6   :  { %v859_v38 = vpop.f32.mrb[16].mxu0 }
 0xbf7   :  { %v860_v39 = vadd.f32 %v966_v37, %v859_v38  ;;  %v1100_v40 = vpop.f32.mrb[17].mxu0 }
 0xbf8   :  { %v862_v41 = vpop.f32.mrb[18].mxu0 }
 0xbf9   :  { %1151 = vtanh.f32 %v860_v39  ;;  %v1101_v42 = vpop.f32.mrb[19].mxu0 }
 0xc03   :  { %v1152_v43 = vpop.eup %1151 }
 0xc04   :  { %v866_v44 = vpack.c.bf16 %v1152_v43, %v1152_v43 }
 0xc06   :  { %1107 = vmatmul.mubr.msk.bf16.vlgmr.msra.gmra.mrb[20].mxu0 %vm206_vm12, %v866_v44 }
 0xcd9   :  { %v920_v45 = vpop.f32.mrb[20].mxu0 }
 0xcda   :  { %v921_v46 = vadd.f32 %v970_v5, %v920_v45  ;;  %v1108_v47 = vpop.f32.mrb[21].mxu0 }
 0xcdb   :  { %v923_v48 = vpop.f32.mrb[22].mxu0 }
 0xcdc   :  { %926 = vst [vmem:[%s1395_s6] sm:$0xff] %v921_v46  ;;  %v1109_v49 = vpop.f32.mrb[23].mxu0 }

</bundles_post_ra>
